<compile_context>
chip_gen: v5e
topology: v5e:2x2
jax: 0.10.0
libtpu: 0.0.40
codegen_flags: <defaults>
</compile_context>

<pallas_src>
import math
from functools import partial

import jax
import jax.numpy as jnp
from jax.experimental import pallas as pl
from jax.experimental.pallas import tpu as pltpu


def grl_copy_kernel(x_ref, o_ref):
    # Pure identity copy of one (tm, 128) lane-dense tile.
    o_ref[...] = x_ref[...]


def _grl_forward_impl(x):
    """Identity forward of GRL, executed as a tiled Pallas copy kernel."""
    orig_shape = x.shape
    flat = x.reshape(-1)
    total = flat.shape[0]

    LANES = 128                       # lane-dense last dim -> unmasked vst
    rows = pl.cdiv(total, LANES)      # rows of the 2-D view

    # Row tile: large (amortize ~0.35us/step grid overhead), sublane-aligned
    # (multiple of 8), and VMEM-budgeted:
    #   tile = tm * 128 * 4B ; in+out double-buffered = 4 * tile
    #   tm = 4096 -> 2 MiB/tile -> ~8 MiB total: fits v5e/v6e/v7x comfortably.
    TM_MAX = 4096
    tm = min(TM_MAX, ((rows + 7) // 8) * 8)

    # Pad rows to a multiple of tm so the grid divides evenly (never a single
    # huge full-M block for ragged sizes).
    rows_pad = ((rows + tm - 1) // tm) * tm
    total_pad = rows_pad * LANES
    if total_pad != total:
        flat = jnp.pad(flat, (0, total_pad - total))
    x2d = flat.reshape(rows_pad, LANES)

    out2d = pl.pallas_call(
        grl_copy_kernel,
        out_shape=jax.ShapeDtypeStruct((rows_pad, LANES), x.dtype),
        grid_spec=pltpu.PrefetchScalarGridSpec(
            num_scalar_prefetch=0,
            grid=(rows_pad // tm,),
            in_specs=[pl.BlockSpec((tm, LANES), lambda i: (i, 0))],
            out_specs=pl.BlockSpec((tm, LANES), lambda i: (i, 0)),
        ),
        compiler_params=pltpu.CompilerParams(
            dimension_semantics=("parallel",),   # lets v7x split over 2 TCs
            vmem_limit_bytes=32 * 1024 * 1024,   # explicit headroom, < 64 MiB (v7x)
        ),
    )(x2d)

    return out2d.reshape(-1)[:total].reshape(orig_shape)


# --- GRL with gradient reversal (backward is plain JAX: -lambda * g) ---
@partial(jax.custom_vjp, nondiff_argnums=(1,))
def grl(x, lambd=1.0):
    return _grl_forward_impl(x)


def _grl_fwd(x, lambd):
    return _grl_forward_impl(x), None


def _grl_bwd(lambd, _res, g):
    # TODO(synk): gradient reversal is a trivial scale; kept in plain JAX
    # rather than a dedicated Pallas kernel.
    return (-lambd * g,)


grl.defvjp(_grl_fwd, _grl_bwd)


if __name__ == "__main__":
    # Small shapes consistent with the module's typical activation input.
    B, C, H, W = 2, 4, 16, 16
    lambd = 1.0

    key = jax.random.PRNGKey(0)
    x = jax.random.normal(key, (B, C, H, W), dtype=jnp.float32)

    out = grl(x, lambd)
    out = jax.block_until_ready(out)

    # Forward semantics: exact identity (same values, shape, dtype).
    assert out.shape == x.shape
    assert out.dtype == x.dtype
    assert jnp.array_equal(out, x)

    # Sanity-check the gradient-reversal backward as well.
    g = jax.grad(lambda a: jnp.sum(grl(a, lambd) * 2.0))(x)
    g = jax.block_until_ready(g)
    assert jnp.allclose(g, -lambd * 2.0 * jnp.ones_like(x), atol=1e-6)

    print("KERNEL_OK")
</pallas_src>

<mosaic_0001>
module attributes {stable_mosaic.version = 11 : i64} {
  func.func @grl_copy_kernel(%arg0: i32, %arg1: memref<16x128xf32, #tpu.memory_space<vmem>>, %arg2: memref<16x128xf32, #tpu.memory_space<vmem>>) attributes {dimension_semantics = [#tpu.dimension_semantics<parallel>], iteration_bounds = array<i64: 1>, scalar_prefetch = 0 : i64, scratch_operands = 0 : i64, tpu.core_type = #tpu.core_type<tc>, window_params = [{transform_indices = @transform_0, window_bounds = array<i64: 16, 128>}, {transform_indices = @transform_1, window_bounds = array<i64: 16, 128>}]} {
    %c0 = arith.constant 0 : index
    %c0_0 = arith.constant 0 : index
    %0 = vector.load %arg1[%c0, %c0_0] : memref<16x128xf32, #tpu.memory_space<vmem>>, vector<16x128xf32>
    %c0_1 = arith.constant 0 : index
    %c0_2 = arith.constant 0 : index
    %1 = vector.load %arg2[%c0_1, %c0_2] : memref<16x128xf32, #tpu.memory_space<vmem>>, vector<16x128xf32>
    tpu.vector_store %arg2[%c0_1, %c0_2], %0 {strides = array<i32>} : memref<16x128xf32, #tpu.memory_space<vmem>>, vector<16x128xf32>,
    return
  }
  func.func @transform_0(%arg0: i32) -> (i32, i32) {
    %c0_i32 = arith.constant 0 : i32
    %c0_i32_0 = arith.constant 0 : i32
    return %arg0, %c0_i32 : i32, i32
  }
  func.func @transform_1(%arg0: i32) -> (i32, i32) {
    %c0_i32 = arith.constant 0 : i32
    %c0_i32_0 = arith.constant 0 : i32
    return %arg0, %c0_i32 : i32, i32
  }
}

</mosaic_0001>

<bundles_post_ra>
// kernel: tpu_custom_call.1
= control target key start
LH: loop header
LB: loop body
LE: loop exit
PB: predicated region body
PF: predicated region fallthrough
CT: control target
= control target key end

     0   :  { %6 = vsyncpa [#allocation3], 0  ;;  %s124_s0 = inlined_call_operand.hbm [shape: f32[16,128], index: 0, kind: input, shape index: {}]   ;;  %s125_s1 = inlined_call_operand.hbm [shape: f32[16,128], index: 1, kind: output, shape index: {}]  }
   0x1   :  { %7 = vsyncpa [#allocation4], 0  ;;  %s12_s8 = sshll.u32 %s124_s0, 4  ;;  %s104_s9 = smov [#allocation2]   ;;  %s13_s8 = int_to_ptr.hbm [resolvable:$true] %s12_s8 }
   0x2   :  { %s14_s10 = sshll.u32 %s104_s9, 4  ;;  %s105_s11 = smov 128   ;;  %s15_s10 = int_to_ptr.vmem [resolvable:$true] %s14_s10 }
   0x3   :  { %s106_s12 = smov 8  }
   0x4   :  { %20 = dma.hbm_to_vmem [thread:$0]  %s13_s8, 256, %s15_s10, [#allocation3], %s105_s11, %s105_s11, %s106_s12  }
   0x5   :  { %100 = dma.done.wait [#allocation3], 256  }
   0x6   :  { %101 = vsyncadd [#allocation3], 4294967040  ;;  %s107_s13 = smov [#allocation5]   ;;  %s35_s17 = sshll.u32 %s125_s1, 4  ;;  %v25_v0 = vld [vmem:[#allocation2] sm:$0xff]  ;;  %v26_v1 = vld [vmem:[#allocation2 + $0x8] sm:$0xff]  ;;  %s36_s17 = int_to_ptr.hbm [resolvable:$true] %s35_s17 }
   0x7   :  { %s33_s14 = sshll.u32 %s107_s13, 4  ;;  %27 = vst [vmem:[#allocation5] sm:$0xff] %v25_v0  ;;  %s34_s14 = int_to_ptr.vmem [resolvable:$true] %s33_s14 }
   0x8   :  { %28 = vst [vmem:[#allocation5 + $0x8] sm:$0xff] %v26_v1 }
   0x9   :  { %41 = dma.vmem_to_hbm [thread:$0]  %s34_s14, 256, %s36_s17, [#allocation4], %s105_s11, %s105_s11, %s106_s12  }
   0xa   :  { %102 = dma.done.wait [#allocation4], 256  }
   0xb   :  { %103 = vsyncadd [#allocation4], 4294967040 }
   0xc   :  { %46 = vsyncpa [#allocation3], 1 }
   0xd   :  { %47 = vsyncpa [#allocation4], 1 }

</bundles_post_ra>
